<compile_context>
chip_gen: v5e
topology: v5e:2x2
jax: 0.10.0
libtpu: 0.0.40
codegen_flags: <defaults>
</compile_context>

<pallas_src>
import math

import jax
import jax.numpy as jnp
from jax.experimental import pallas as pl
from jax.experimental.pallas import tpu as pltpu


# ----------------------------- fused Pallas kernel -----------------------------

def _build_fused_kernel(has_shortcut, n_layers):
    """Build the fused forward kernel for a fixed layer structure."""

    def kernel(gammas_ref, x_ref, *rest):
        o_ref = rest[-1]
        p = rest[:-1]

        x = x_ref[...]                                            # (TB, Din)
        idx = 0
        for li in range(n_layers):
            ct2g = p[idx][...]                                    # (Din, K) = (2*gamma*c)^T
            cbias = p[idx + 1][...]                               # (1, K)   = -gamma*||c||^2
            idx += 2
            gamma = gammas_ref[li]                                # scalar in SMEM

            xc = jnp.dot(x, ct2g, preferred_element_type=jnp.float32)   # MXU
            x2 = jnp.sum(x * x, axis=-1, keepdims=True)                 # (TB, 1)
            # exponent = -gamma * ||x - c||^2 ; clamp at 0 (gamma > 0 here).
            expo = jnp.minimum(xc + cbias - gamma * x2, 0.0)
            rbf = jnp.exp(expo)                                         # EUP

            if has_shortcut[li]:
                wsT = p[idx][...]        # (Din, K)  BN scale already folded in
                bsf = p[idx + 1][...]    # (1, K)    bias*scale + BN shift
                scale = p[idx + 2][...]  # (1, K)    BN scale (for rbf term)
                idx += 3
                x = (rbf * scale
                     + jnp.dot(x, wsT, preferred_element_type=jnp.float32)
                     + bsf)
            else:
                scale = p[idx][...]      # (1, K)
                shift = p[idx + 1][...]  # (1, K)
                idx += 2
                x = (rbf + x) * scale + shift
            # TODO(synk): nn.Dropout(0.3) is stochastic; identity in inference mode.

        # Output head: Linear(prev,64) -> exact GELU -> Linear(64,1)
        w1T = p[idx][...]                # (prev, 64)
        b1 = p[idx + 1][...]             # (1, 64)
        w2r = p[idx + 2][...]            # (1, 64)
        b2 = p[idx + 3][...]             # (1, 1)
        h = jnp.dot(x, w1T, preferred_element_type=jnp.float32) + b1
        g = 0.5 * h * (1.0 + jax.lax.erf(h * (1.0 / math.sqrt(2.0))))
        # N=1 output: broadcast multiply + lane reduce instead of an MXU pass.
        o_ref[...] = jnp.sum(g * w2r, axis=-1, keepdims=True) + b2

    return kernel


# --------------------------- parameter creation ----------------------------

def init_params(key, in_features, layer_config):
    """Synthetic init mirroring the PyTorch module, with all constant folding
    (weight transposes, centers^2, gamma, eval-mode BatchNorm) done here."""
    eps = 1e-5
    layers = []
    gammas = []
    has_shortcut = []
    prev = in_features

    for units, gamma in layer_config:
        key, kc, kw, kb = jax.random.split(key, 4)
        # xavier_normal_ for centers: std = sqrt(2 / (fan_in + fan_out))
        std = math.sqrt(2.0 / (prev + units))
        centers = std * jax.random.normal(kc, (units, prev), jnp.float32)

        # BatchNorm1d fresh defaults: weight=1, bias=0, running_mean=0, running_var=1.
        bn_w = jnp.ones((units,), jnp.float32)
        bn_b = jnp.zeros((units,), jnp.float32)
        rmean = jnp.zeros((units,), jnp.float32)
        rvar = jnp.ones((units,), jnp.float32)
        scale = (bn_w / jnp.sqrt(rvar + eps)).reshape(1, units)
        shift = (bn_b - rmean * (bn_w / jnp.sqrt(rvar + eps))).reshape(1, units)

        # Fold gamma into the centers matmul and a per-center bias.
        ct2g = (2.0 * gamma * centers).T                                 # (prev, units)
        cbias = (-gamma * jnp.sum(centers * centers, axis=1)).reshape(1, units)

        lp = dict(ct2g=ct2g, cbias=cbias)
        if prev != units:
            bound = 1.0 / math.sqrt(prev)                    # PyTorch Linear default
            ws = jax.random.uniform(kw, (units, prev), jnp.float32, -bound, bound)
            bs = jax.random.uniform(kb, (units,), jnp.float32, -bound, bound)
            lp["wsT"] = ws.T * scale                         # BN scale folded into weight
            lp["bsf"] = bs.reshape(1, units) * scale + shift  # folded bias
            lp["scale"] = scale
            has_shortcut.append(True)
        else:
            lp["scale"] = scale
            lp["shift"] = shift
            has_shortcut.append(False)

        layers.append(lp)
        gammas.append(gamma)
        prev = units

    # Output head: Linear(prev, 64) -> GELU -> Linear(64, 1), pre-transposed.
    key, k1, k2, k3, k4 = jax.random.split(key, 5)
    b1lim = 1.0 / math.sqrt(prev)
    b2lim = 1.0 / math.sqrt(64)
    w1 = jax.random.uniform(k1, (64, prev), jnp.float32, -b1lim, b1lim)
    b1 = jax.random.uniform(k2, (1, 64), jnp.float32, -b1lim, b1lim)
    w2 = jax.random.uniform(k3, (1, 64), jnp.float32, -b2lim, b2lim)
    b2 = jax.random.uniform(k4, (1, 1), jnp.float32, -b2lim, b2lim)
    head = dict(w1T=w1.T, b1=b1, w2row=w2, b2=b2)

    return dict(gammas=jnp.array(gammas, jnp.float32), layers=layers,
                head=head, has_shortcut=tuple(has_shortcut))


# ------------------------------- wrapper ---------------------------------

def rbfnn_forward(params, x):
    B, F = x.shape
    has_sc = params["has_shortcut"]
    n_layers = len(params["layers"])

    # Flatten per-layer + head operands (all small 2-D constants kept in VMEM).
    flat = []
    for li, lp in enumerate(params["layers"]):
        flat += [lp["ct2g"], lp["cbias"]]
        if has_sc[li]:
            flat += [lp["wsT"], lp["bsf"], lp["scale"]]
        else:
            flat += [lp["scale"], lp["shift"]]
    hd = params["head"]
    flat += [hd["w1T"], hd["b1"], hd["w2row"], hd["b2"]]

    # Batch tiling: pad B to a multiple of 8 (f32 sublanes), tile at up to 128
    # rows, and mark the batch grid axis "parallel" (megacore on v7x).
    B_pad = ((B + 7) // 8) * 8
    TB = min(B_pad, 128)
    B_pad = ((B_pad + TB - 1) // TB) * TB
    xp = jnp.pad(x, ((0, B_pad - B), (0, 0))) if B_pad != B else x
    grid = (B_pad // TB,)

    const_specs = [pl.BlockSpec(a.shape, lambda i: (0, 0)) for a in flat]
    in_specs = ([pl.BlockSpec(memory_space=pltpu.MemorySpace.SMEM),   # gammas
                 pl.BlockSpec((TB, F), lambda i: (i, 0))]             # x tile
                + const_specs)
    out_specs = pl.BlockSpec((TB, 1), lambda i: (i, 0))

    out = pl.pallas_call(
        _build_fused_kernel(has_sc, n_layers),
        out_shape=jax.ShapeDtypeStruct((B_pad, 1), jnp.float32),
        grid=grid,
        in_specs=in_specs,
        out_specs=out_specs,
        compiler_params=pltpu.CompilerParams(
            dimension_semantics=("parallel",)),
    )(params["gammas"], xp, *flat)

    return out[:B] if B_pad != B else out


# ----------------------- pure-JAX reference (same math) ---------------------

def ref_forward(params, x):
    g = params["gammas"]
    for li, lp in enumerate(params["layers"]):
        xc = x @ lp["ct2g"]
        x2 = jnp.sum(x * x, axis=-1, keepdims=True)
        expo = jnp.minimum(xc + lp["cbias"] - g[li] * x2, 0.0)
        rbf = jnp.exp(expo)
        if "wsT" in lp:
            x = rbf * lp["scale"] + x @ lp["wsT"] + lp["bsf"]
        else:
            x = (rbf + x) * lp["scale"] + lp["shift"]
    h = x @ params["head"]["w1T"] + params["head"]["b1"]
    gelu = 0.5 * h * (1.0 + jax.lax.erf(h * (1.0 / math.sqrt(2.0))))
    return jnp.sum(gelu * params["head"]["w2row"], axis=-1, keepdims=True) + params["head"]["b2"]


# --------------------------------- main ------------------------------------

if __name__ == "__main__":
    key = jax.random.PRNGKey(0)
    key, kx = jax.random.split(key)

    in_features = 16
    layer_config = [(32, 0.1), (32, 0.05)]   # first layer: Linear shortcut,
                                             # second layer: Identity shortcut
    batch = 8

    params = init_params(key, in_features, layer_config)
    x = jax.random.normal(kx, (batch, in_features), jnp.float32)

    out = jax.block_until_ready(rbfnn_forward(params, x))
    ref = jax.block_until_ready(ref_forward(params, x))

    assert out.shape == (batch, 1) and out.dtype == jnp.float32
    assert jnp.allclose(out, ref, rtol=5e-2, atol=5e-2)
    print("KERNEL_OK")
</pallas_src>

<mosaic_0001>
module attributes {stable_mosaic.version = 11 : i64} {
  func.func @kernel(%arg0: i32, %arg1: memref<2xf32, #tpu.memory_space<smem>>, %arg2: memref<8x16xf32, #tpu.memory_space<vmem>>, %arg3: memref<16x32xf32, #tpu.memory_space<vmem>>, %arg4: memref<1x32xf32, #tpu.memory_space<vmem>>, %arg5: memref<16x32xf32, #tpu.memory_space<vmem>>, %arg6: memref<1x32xf32, #tpu.memory_space<vmem>>, %arg7: memref<1x32xf32, #tpu.memory_space<vmem>>, %arg8: memref<32x32xf32, #tpu.memory_space<vmem>>, %arg9: memref<1x32xf32, #tpu.memory_space<vmem>>, %arg10: memref<1x32xf32, #tpu.memory_space<vmem>>, %arg11: memref<1x32xf32, #tpu.memory_space<vmem>>, %arg12: memref<32x64xf32, #tpu.memory_space<vmem>>, %arg13: memref<1x64xf32, #tpu.memory_space<vmem>>, %arg14: memref<1x64xf32, #tpu.memory_space<vmem>>, %arg15: memref<1x1xf32, #tpu.memory_space<vmem>>, %arg16: memref<8x1xf32, #tpu.memory_space<vmem>>) attributes {dimension_semantics = [#tpu.dimension_semantics<parallel>], iteration_bounds = array<i64: 1>, scalar_prefetch = 0 : i64, scratch_operands = 0 : i64, tpu.core_type = #tpu.core_type<tc>, window_params = [{transform_indices = @transform_0, window_bounds = array<i64: 2>}, {transform_indices = @transform_1, window_bounds = array<i64: 8, 16>}, {pipeline_mode = #tpu.pipeline_mode<synchronous>, transform_indices = @transform_2, window_bounds = array<i64: 16, 32>}, {pipeline_mode = #tpu.pipeline_mode<synchronous>, transform_indices = @transform_3, window_bounds = array<i64: 1, 32>}, {pipeline_mode = #tpu.pipeline_mode<synchronous>, transform_indices = @transform_4, window_bounds = array<i64: 16, 32>}, {pipeline_mode = #tpu.pipeline_mode<synchronous>, transform_indices = @transform_5, window_bounds = array<i64: 1, 32>}, {pipeline_mode = #tpu.pipeline_mode<synchronous>, transform_indices = @transform_6, window_bounds = array<i64: 1, 32>}, {pipeline_mode = #tpu.pipeline_mode<synchronous>, transform_indices = @transform_7, window_bounds = array<i64: 32, 32>}, {pipeline_mode = #tpu.pipeline_mode<synchronous>, transform_indices = @transform_8, window_bounds = array<i64: 1, 32>}, {pipeline_mode = #tpu.pipeline_mode<synchronous>, transform_indices = @transform_9, window_bounds = array<i64: 1, 32>}, {pipeline_mode = #tpu.pipeline_mode<synchronous>, transform_indices = @transform_10, window_bounds = array<i64: 1, 32>}, {pipeline_mode = #tpu.pipeline_mode<synchronous>, transform_indices = @transform_11, window_bounds = array<i64: 32, 64>}, {pipeline_mode = #tpu.pipeline_mode<synchronous>, transform_indices = @transform_12, window_bounds = array<i64: 1, 64>}, {pipeline_mode = #tpu.pipeline_mode<synchronous>, transform_indices = @transform_13, window_bounds = array<i64: 1, 64>}, {pipeline_mode = #tpu.pipeline_mode<synchronous>, transform_indices = @transform_14, window_bounds = array<i64: 1, 1>}, {transform_indices = @transform_15, window_bounds = array<i64: 8, 1>}]} {
    %c0 = arith.constant 0 : index
    %c0_0 = arith.constant 0 : index
    %0 = vector.load %arg2[%c0, %c0_0] : memref<8x16xf32, #tpu.memory_space<vmem>>, vector<8x16xf32>
    %c0_1 = arith.constant 0 : index
    %c0_2 = arith.constant 0 : index
    %1 = vector.load %arg3[%c0_1, %c0_2] : memref<16x32xf32, #tpu.memory_space<vmem>>, vector<16x32xf32>
    %c0_3 = arith.constant 0 : index
    %c0_4 = arith.constant 0 : index
    %2 = vector.load %arg4[%c0_3, %c0_4] : memref<1x32xf32, #tpu.memory_space<vmem>>, vector<1x32xf32>
    %c0_5 = arith.constant 0 : index
    %3 = memref.load %arg1[%c0_5] : memref<2xf32, #tpu.memory_space<smem>>
    %cst = arith.constant dense<0.000000e+00> : vector<8x32xf32>
    %4 = tpu.matmul %0, %1, %cst {dimension_numbers = #tpu.dot_dimension_numbers<[1], [0], [0], [1], [0, 0, 1, 1], [], []>} : vector<8x16xf32>, vector<16x32xf32>, vector<8x32xf32> -> vector<8x32xf32>
    %5 = arith.mulf %0, %0 : vector<8x16xf32>
    %cst_6 = arith.constant dense<0.000000e+00> : vector<8xf32>
    %6 = vector.multi_reduction <add>, %5, %cst_6 [1] : vector<8x16xf32> to vector<8xf32>
    %7 = vector.shape_cast %6 : vector<8xf32> to vector<8x1xf32>
    %8 = vector.broadcast %2 : vector<1x32xf32> to vector<8x32xf32>
    %9 = arith.addf %4, %8 : vector<8x32xf32>
    %10 = vector.broadcast %3 : f32 to vector<8x1xf32>
    %11 = arith.mulf %10, %7 : vector<8x1xf32>
    %12 = vector.broadcast %11 : vector<8x1xf32> to vector<8x32xf32>
    %13 = arith.subf %9, %12 : vector<8x32xf32>
    %cst_7 = arith.constant 0.000000e+00 : f32
    %14 = vector.broadcast %cst_7 : f32 to vector<8x32xf32>
    %15 = arith.minimumf %13, %14 : vector<8x32xf32>
    %16 = math.exp %15 : vector<8x32xf32>
    %c0_8 = arith.constant 0 : index
    %c0_9 = arith.constant 0 : index
    %17 = vector.load %arg5[%c0_8, %c0_9] : memref<16x32xf32, #tpu.memory_space<vmem>>, vector<16x32xf32>
    %c0_10 = arith.constant 0 : index
    %c0_11 = arith.constant 0 : index
    %18 = vector.load %arg6[%c0_10, %c0_11] : memref<1x32xf32, #tpu.memory_space<vmem>>, vector<1x32xf32>
    %c0_12 = arith.constant 0 : index
    %c0_13 = arith.constant 0 : index
    %19 = vector.load %arg7[%c0_12, %c0_13] : memref<1x32xf32, #tpu.memory_space<vmem>>, vector<1x32xf32>
    %20 = vector.broadcast %19 : vector<1x32xf32> to vector<8x32xf32>
    %21 = arith.mulf %16, %20 : vector<8x32xf32>
    %cst_14 = arith.constant dense<0.000000e+00> : vector<8x32xf32>
    %22 = tpu.matmul %0, %17, %cst_14 {dimension_numbers = #tpu.dot_dimension_numbers<[1], [0], [0], [1], [0, 0, 1, 1], [], []>} : vector<8x16xf32>, vector<16x32xf32>, vector<8x32xf32> -> vector<8x32xf32>
    %23 = arith.addf %21, %22 : vector<8x32xf32>
    %24 = vector.broadcast %18 : vector<1x32xf32> to vector<8x32xf32>
    %25 = arith.addf %23, %24 : vector<8x32xf32>
    %c0_15 = arith.constant 0 : index
    %c0_16 = arith.constant 0 : index
    %26 = vector.load %arg8[%c0_15, %c0_16] : memref<32x32xf32, #tpu.memory_space<vmem>>, vector<32x32xf32>
    %c0_17 = arith.constant 0 : index
    %c0_18 = arith.constant 0 : index
    %27 = vector.load %arg9[%c0_17, %c0_18] : memref<1x32xf32, #tpu.memory_space<vmem>>, vector<1x32xf32>
    %c1 = arith.constant 1 : index
    %28 = memref.load %arg1[%c1] : memref<2xf32, #tpu.memory_space<smem>>
    %cst_19 = arith.constant dense<0.000000e+00> : vector<8x32xf32>
    %29 = tpu.matmul %25, %26, %cst_19 {dimension_numbers = #tpu.dot_dimension_numbers<[1], [0], [0], [1], [0, 0, 1, 1], [], []>} : vector<8x32xf32>, vector<32x32xf32>, vector<8x32xf32> -> vector<8x32xf32>
    %30 = arith.mulf %25, %25 : vector<8x32xf32>
    %cst_20 = arith.constant dense<0.000000e+00> : vector<8xf32>
    %31 = vector.multi_reduction <add>, %30, %cst_20 [1] : vector<8x32xf32> to vector<8xf32>
    %32 = vector.shape_cast %31 : vector<8xf32> to vector<8x1xf32>
    %33 = vector.broadcast %27 : vector<1x32xf32> to vector<8x32xf32>
    %34 = arith.addf %29, %33 : vector<8x32xf32>
    %35 = vector.broadcast %28 : f32 to vector<8x1xf32>
    %36 = arith.mulf %35, %32 : vector<8x1xf32>
    %37 = vector.broadcast %36 : vector<8x1xf32> to vector<8x32xf32>
    %38 = arith.subf %34, %37 : vector<8x32xf32>
    %cst_21 = arith.constant 0.000000e+00 : f32
    %39 = vector.broadcast %cst_21 : f32 to vector<8x32xf32>
    %40 = arith.minimumf %38, %39 : vector<8x32xf32>
    %41 = math.exp %40 : vector<8x32xf32>
    %c0_22 = arith.constant 0 : index
    %c0_23 = arith.constant 0 : index
    %42 = vector.load %arg10[%c0_22, %c0_23] : memref<1x32xf32, #tpu.memory_space<vmem>>, vector<1x32xf32>
    %c0_24 = arith.constant 0 : index
    %c0_25 = arith.constant 0 : index
    %43 = vector.load %arg11[%c0_24, %c0_25] : memref<1x32xf32, #tpu.memory_space<vmem>>, vector<1x32xf32>
    %44 = arith.addf %41, %25 : vector<8x32xf32>
    %45 = vector.broadcast %42 : vector<1x32xf32> to vector<8x32xf32>
    %46 = arith.mulf %44, %45 : vector<8x32xf32>
    %47 = vector.broadcast %43 : vector<1x32xf32> to vector<8x32xf32>
    %48 = arith.addf %46, %47 : vector<8x32xf32>
    %c0_26 = arith.constant 0 : index
    %c0_27 = arith.constant 0 : index
    %49 = vector.load %arg12[%c0_26, %c0_27] : memref<32x64xf32, #tpu.memory_space<vmem>>, vector<32x64xf32>
    %c0_28 = arith.constant 0 : index
    %c0_29 = arith.constant 0 : index
    %50 = vector.load %arg13[%c0_28, %c0_29] : memref<1x64xf32, #tpu.memory_space<vmem>>, vector<1x64xf32>
    %c0_30 = arith.constant 0 : index
    %c0_31 = arith.constant 0 : index
    %51 = vector.load %arg14[%c0_30, %c0_31] : memref<1x64xf32, #tpu.memory_space<vmem>>, vector<1x64xf32>
    %c0_32 = arith.constant 0 : index
    %c0_33 = arith.constant 0 : index
    %52 = vector.load %arg15[%c0_32, %c0_33] : memref<1x1xf32, #tpu.memory_space<vmem>>, vector<1x1xf32>
    %cst_34 = arith.constant dense<0.000000e+00> : vector<8x64xf32>
    %53 = tpu.matmul %48, %49, %cst_34 {dimension_numbers = #tpu.dot_dimension_numbers<[1], [0], [0], [1], [0, 0, 1, 1], [], []>} : vector<8x32xf32>, vector<32x64xf32>, vector<8x64xf32> -> vector<8x64xf32>
    %54 = vector.broadcast %50 : vector<1x64xf32> to vector<8x64xf32>
    %55 = arith.addf %53, %54 : vector<8x64xf32>
    %cst_35 = arith.constant 5.000000e-01 : f32
    %56 = vector.broadcast %cst_35 : f32 to vector<8x64xf32>
    %57 = arith.mulf %56, %55 : vector<8x64xf32>
    %cst_36 = arith.constant 0.707106769 : f32
    %58 = vector.broadcast %cst_36 : f32 to vector<8x64xf32>
    %59 = arith.mulf %55, %58 : vector<8x64xf32>
    %60 = math.erf %59 : vector<8x64xf32>
    %cst_37 = arith.constant 1.000000e+00 : f32
    %61 = vector.broadcast %cst_37 : f32 to vector<8x64xf32>
    %62 = arith.addf %61, %60 : vector<8x64xf32>
    %63 = arith.mulf %57, %62 : vector<8x64xf32>
    %64 = vector.broadcast %51 : vector<1x64xf32> to vector<8x64xf32>
    %65 = arith.mulf %63, %64 : vector<8x64xf32>
    %cst_38 = arith.constant dense<0.000000e+00> : vector<8xf32>
    %66 = vector.multi_reduction <add>, %65, %cst_38 [1] : vector<8x64xf32> to vector<8xf32>
    %67 = vector.shape_cast %66 : vector<8xf32> to vector<8x1xf32>
    %68 = vector.broadcast %52 : vector<1x1xf32> to vector<8x1xf32>
    %69 = arith.addf %67, %68 : vector<8x1xf32>
    %c0_39 = arith.constant 0 : index
    %c0_40 = arith.constant 0 : index
    %70 = vector.load %arg16[%c0_39, %c0_40] : memref<8x1xf32, #tpu.memory_space<vmem>>, vector<8x1xf32>
    tpu.vector_store %arg16[%c0_39, %c0_40], %69 {strides = array<i32>} : memref<8x1xf32, #tpu.memory_space<vmem>>, vector<8x1xf32>,
    return
  }
  func.func @transform_0(%arg0: i32) -> i32 {
    %c0_i32 = arith.constant 0 : i32
    %c0_i32_0 = arith.constant 0 : i32
    return %c0_i32 : i32
  }
  func.func @transform_1(%arg0: i32) -> (i32, i32) {
    %c0_i32 = arith.constant 0 : i32
    %c0_i32_0 = arith.constant 0 : i32
    return %arg0, %c0_i32 : i32, i32
  }
  func.func @transform_2(%arg0: i32) -> (i32, i32) {
    %c0_i32 = arith.constant 0 : i32
    %c0_i32_0 = arith.constant 0 : i32
    %c0_i32_1 = arith.constant 0 : i32
    return %c0_i32, %c0_i32_0 : i32, i32
  }
  func.func @transform_3(%arg0: i32) -> (i32, i32) {
    %c0_i32 = arith.constant 0 : i32
    %c0_i32_0 = arith.constant 0 : i32
    %c0_i32_1 = arith.constant 0 : i32
    return %c0_i32, %c0_i32_0 : i32, i32
  }
  func.func @transform_4(%arg0: i32) -> (i32, i32) {
    %c0_i32 = arith.constant 0 : i32
    %c0_i32_0 = arith.constant 0 : i32
    %c0_i32_1 = arith.constant 0 : i32
    return %c0_i32, %c0_i32_0 : i32, i32
  }
  func.func @transform_5(%arg0: i32) -> (i32, i32) {
    %c0_i32 = arith.constant 0 : i32
    %c0_i32_0 = arith.constant 0 : i32
    %c0_i32_1 = arith.constant 0 : i32
    return %c0_i32, %c0_i32_0 : i32, i32
  }
  func.func @transform_6(%arg0: i32) -> (i32, i32) {
    %c0_i32 = arith.constant 0 : i32
    %c0_i32_0 = arith.constant 0 : i32
    %c0_i32_1 = arith.constant 0 : i32
    return %c0_i32, %c0_i32_0 : i32, i32
  }
  func.func @transform_7(%arg0: i32) -> (i32, i32) {
    %c0_i32 = arith.constant 0 : i32
    %c0_i32_0 = arith.constant 0 : i32
    %c0_i32_1 = arith.constant 0 : i32
    return %c0_i32, %c0_i32_0 : i32, i32
  }
  func.func @transform_8(%arg0: i32) -> (i32, i32) {
    %c0_i32 = arith.constant 0 : i32
    %c0_i32_0 = arith.constant 0 : i32
    %c0_i32_1 = arith.constant 0 : i32
    return %c0_i32, %c0_i32_0 : i32, i32
  }
  func.func @transform_9(%arg0: i32) -> (i32, i32) {
    %c0_i32 = arith.constant 0 : i32
    %c0_i32_0 = arith.constant 0 : i32
    %c0_i32_1 = arith.constant 0 : i32
    return %c0_i32, %c0_i32_0 : i32, i32
  }
  func.func @transform_10(%arg0: i32) -> (i32, i32) {
    %c0_i32 = arith.constant 0 : i32
    %c0_i32_0 = arith.constant 0 : i32
    %c0_i32_1 = arith.constant 0 : i32
    return %c0_i32, %c0_i32_0 : i32, i32
  }
  func.func @transform_11(%arg0: i32) -> (i32, i32) {
    %c0_i32 = arith.constant 0 : i32
    %c0_i32_0 = arith.constant 0 : i32
    %c0_i32_1 = arith.constant 0 : i32
    return %c0_i32, %c0_i32_0 : i32, i32
  }
  func.func @transform_12(%arg0: i32) -> (i32, i32) {
    %c0_i32 = arith.constant 0 : i32
    %c0_i32_0 = arith.constant 0 : i32
    %c0_i32_1 = arith.constant 0 : i32
    return %c0_i32, %c0_i32_0 : i32, i32
  }
  func.func @transform_13(%arg0: i32) -> (i32, i32) {
    %c0_i32 = arith.constant 0 : i32
    %c0_i32_0 = arith.constant 0 : i32
    %c0_i32_1 = arith.constant 0 : i32
    return %c0_i32, %c0_i32_0 : i32, i32
  }
  func.func @transform_14(%arg0: i32) -> (i32, i32) {
    %c0_i32 = arith.constant 0 : i32
    %c0_i32_0 = arith.constant 0 : i32
    %c0_i32_1 = arith.constant 0 : i32
    return %c0_i32, %c0_i32_0 : i32, i32
  }
  func.func @transform_15(%arg0: i32) -> (i32, i32) {
    %c0_i32 = arith.constant 0 : i32
    %c0_i32_0 = arith.constant 0 : i32
    return %arg0, %c0_i32 : i32, i32
  }
}

</mosaic_0001>

<bundles_post_ra>
// kernel: tpu_custom_call.1
= control target key start
LH: loop header
LB: loop body
LE: loop exit
PB: predicated region body
PF: predicated region fallthrough
CT: control target
= control target key end

     0   :  { %s689_s0 = inlined_call_operand.vmem [shape: f32[2], index: 0, kind: input, shape index: {}]   ;;  %s690_s1 = inlined_call_operand.hbm [shape: f32[8,16], index: 1, kind: input, shape index: {}]   ;;  %s691_s2 = inlined_call_operand.hbm [shape: f32[16,32], index: 2, kind: input, shape index: {}]   ;;  %s692_s3 = inlined_call_operand.vmem [shape: f32[1,32], index: 3, kind: input, shape index: {}]   ;;  %s693_s4 = inlined_call_operand.hbm [shape: f32[16,32], index: 4, kind: input, shape index: {}]   ;;  %s694_s5 = inlined_call_operand.vmem [shape: f32[1,32], index: 5, kind: input, shape index: {}]   ;;  %s695_s6 = inlined_call_operand.vmem [shape: f32[1,32], index: 6, kind: input, shape index: {}]   ;;  %s696_s7 = inlined_call_operand.hbm [shape: f32[32,32], index: 7, kind: input, shape index: {}]   ;;  %s697_s8 = inlined_call_operand.vmem [shape: f32[1,32], index: 8, kind: input, shape index: {}]   ;;  %s698_s9 = inlined_call_operand.vmem [shape: f32[1,32], index: 9, kind: input, shape index: {}]   ;;  %s699_s10 = inlined_call_operand.vmem [shape: f32[1,32], index: 10, kind: input, shape index: {}]   ;;  %s700_s11 = inlined_call_operand.hbm [shape: f32[32,64], index: 11, kind: input, shape index: {}]   ;;  %s701_s12 = inlined_call_operand.vmem [shape: f32[1,64], index: 12, kind: input, shape index: {}]   ;;  %s702_s13 = inlined_call_operand.vmem [shape: f32[1,64], index: 13, kind: input, shape index: {}]   ;;  %s703_s14 = inlined_call_operand.<no memory space> [shape: f32[1,1], index: 14, kind: input, shape index: {}]   ;;  %s704_s15 = inlined_call_operand.vmem [shape: f32[8,1], index: 15, kind: output, shape index: {}]  }
   0x1   :  { %v20_v0 = vstv %s703_s14 }
   0x2   :  { %21 = vst [vmem:[#allocation2] sm:$0x1] %v20_v0 }
   0x3   :  { %22 = vsyncpa [#allocation5], 0 }
   0x4   :  { %23 = vsyncpa [#allocation4], 0 }
   0x5   :  { %24 = vsyncpa [#allocation8], 0  ;;  %s50_s22 = sshll.u32 %s691_s2, 4  ;;  %s51_s22 = int_to_ptr.hbm [resolvable:$true] %s50_s22 }
   0x6   :  { %25 = vsyncpa [#allocation11], 0  ;;  %s538_s23 = smov [#allocation7]   ;;  %s82_s27 = sshll.u32 %s696_s7, 4  ;;  %s83_s27 = int_to_ptr.hbm [resolvable:$true] %s82_s27 }
   0x7   :  { %s52_s24 = sshll.u32 %s538_s23, 4  ;;  %s539_s28 = smov 128   ;;  %s53_s24 = int_to_ptr.vmem [resolvable:$true] %s52_s24 }
   0x8   :  { %s540_s29 = smov 8   ;;  %s541_s14 = smov [#allocation10]  }
   0x9   :  { %58 = dma.hbm_to_vmem [thread:$0]  %s51_s22, 256, %s53_s24, [#allocation8], %s539_s28, %s539_s28, %s540_s29  }
   0xa   :  { %s84_s30 = sshll.u32 %s541_s14, 4  ;;  %s31_s17 = sshll.u32 %s689_s0, 4  ;;  %s85_s30 = int_to_ptr.vmem [resolvable:$true] %s84_s30  ;;  %s32_s17 = int_to_ptr.vmem [resolvable:$true] %s31_s17 }
   0xb   :  { %90 = dma.hbm_to_vmem [thread:$0]  %s83_s27, 512, %s85_s30, [#allocation11], %s539_s28, %s539_s28, %s540_s29  }
   0xc   :  { %s40_s19 = sshll.u32 %s690_s1, 4  ;;  %s542_s20 = smov [#allocation3]   ;;  %s41_s19 = int_to_ptr.hbm [resolvable:$true] %s40_s19 }
   0xd   :  { %34 = dma.vmem_to_smem %s32_s17, 16, %s542_s20, [#allocation5]  }
   0xe   :  { %s543_s21 = smov [#allocation6]   ;;  %s65_s25 = sshll.u32 %s693_s4, 4  ;;  %s66_s25 = int_to_ptr.hbm [resolvable:$true] %s65_s25 }
   0xf   :  { %s42_s22 = sshll.u32 %s543_s21, 4  ;;  %s101_s27 = sshll.u32 %s700_s11, 4  ;;  %s43_s22 = int_to_ptr.vmem [resolvable:$true] %s42_s22  ;;  %s102_s27 = int_to_ptr.hbm [resolvable:$true] %s101_s27 }
  0x10   :  { %45 = dma.hbm_to_vmem [thread:$0]  %s41_s19, 128, %s43_s22, [#allocation4]  }
  0x11   :  { %s544_s14 = smov [#allocation9]   ;;  %s545_s1 = smov [#allocation12]  }
  0x12   :  { %s67_s30 = sshll.u32 %s544_s14, 4  ;;  %s103_s16 = sshll.u32 %s545_s1, 4  ;;  %s68_s30 = int_to_ptr.vmem [resolvable:$true] %s67_s30  ;;  %s104_s16 = int_to_ptr.vmem [resolvable:$true] %s103_s16 }
  0x13   :  { %73 = dma.hbm_to_vmem [thread:$0]  %s66_s25, 256, %s68_s30, [#allocation8], %s539_s28, %s539_s28, %s540_s29  }
  0x14   :  { %109 = dma.hbm_to_vmem [thread:$0]  %s102_s27, 512, %s104_s16, [#allocation11], %s539_s28, %s539_s28, %s540_s29  }
  0x15   :  { %530 = dma.done.wait [#allocation5], 16  }
  0x16   :  { %531 = vsyncadd [#allocation5], 4294967280 }
  0x17   :  { %532 = dma.done.wait [#allocation4], 128  }
  0x18   :  { %533 = vsyncadd [#allocation4], 4294967168 }
  0x19   :  { %534 = dma.done.wait [#allocation8], 512  }
  0x1a   :  { %535 = vsyncadd [#allocation8], 4294966784 }
  0x1b   :  { %536 = dma.done.wait [#allocation11], 1024  }
  0x1c   :  { %537 = vsyncadd [#allocation11], 4294966272 }
  0x1d   :  { %140 = sfence }
  0x1e   :  { %v143_v1 = vld [vmem:[#allocation7 + $0x8] sm:$0xff]  ;;  %v142_v2 = vld [vmem:[#allocation7] sm:$0xff]  ;;  %v141_v3 = vld [vmem:[#allocation6] sm:$0xff]  ;;  %vm147_vm0 = vcmask 130048   ;;  %s145_s4 = sld [smem:[#allocation3]]  ;;  %vm223_vm1 = vcmask 261120  }
  0x1f   :  { %171 = vmatpush.msra.mxu0 %v143_v1  ;;  %v146_v4 = vmul.f32 %v141_v3, %v141_v3  ;;  %v184_v5 = vld [vmem:[#allocation9 + $0x8] sm:$0xff]  ;;  %v183_v6 = vld [vmem:[#allocation9] sm:$0xff]  ;;  %v217_v10 = vld [vmem:[#allocation10 + $0x8] sm:$0xff]  ;;  %vm351_vm6 = vcmask 523264   ;;  %vm359_vm7 = vcmask 7168  }
  0x20   :  { %205 = vmatpush.msra.mxu1 %v184_v5  ;;  %v219_v8 = vld [vmem:[#allocation10 + $0x18] sm:$0xff]  ;;  %v218_v9 = vld [vmem:[#allocation10 + $0x10] sm:$0xff]  ;;  %v216_v11 = vld [vmem:[#allocation10] sm:$0xff] }
  0x21   :  { %172 = vmatpush.msra.mxu0 %v142_v2  ;;  %v148_v7 = vsel %vm147_vm0, %v146_v4, 0.0  ;;  %245 = vmatpush.msra.mxu2 %v219_v8  ;;  %v383_v14 = vld [vmem:[%s692_s3] ss:$0 sm:$0xff]  ;;  %v273_v30 = vld [vmem:[#allocation12 + $0x18] sm:$0xff]  ;;  %v271_v32 = vld [vmem:[#allocation12 + $0x8] sm:$0xff]  ;;  %s371_s3 = sld [smem:[#allocation3 + $0x1]] }
  0x22   :  { %369 = vmatmul.msk.f32.vlgmr.msra.gmra.mxu0 %vm147_vm0, %v141_v3  ;;  %149 = vadd.xlane.f32.xlu0 %v148_v7  ;;  %v384_v21 = vld [vmem:[%s695_s6] ss:$0 sm:$0xff]  ;;  %v270_v33 = vld [vmem:[#allocation12] sm:$0xff] }
  0x23   :  { %206 = vmatpush.msra.mxu1 %v183_v6  ;;  %246 = vmatpush.msra.mxu2 %v218_v9  ;;  %v385_v25 = vld [vmem:[%s694_s5] ss:$0 sm:$0xff] }
  0x24   :  { %370 = vmatmul.msk.f32.vlgmr.msra.gmra.mxu1 %vm147_vm0, %v141_v3  ;;  %v177_v12 = vstv %s145_s4  ;;  %v272_v31 = vld [vmem:[#allocation12 + $0x10] sm:$0xff]  ;;  %295 = vmatpush.msra.mxu3 %v273_v30 }
  0x25   :  { %247 = vmatpush.msra.mxu2 %v217_v10  ;;  %v386_v34 = vld [vmem:[%s697_s8] ss:$0 sm:$0xff] }
  0x26   :  { %296 = vmatpush.msra.mxu3 %v272_v31  ;;  %v387_v43 = vld [vmem:[%s698_s9] ss:$0 sm:$0xff] }
  0x27   :  { %248 = vmatpush.msra.mxu2 %v216_v11  ;;  %v253_v35 = vstv %s371_s3  ;;  %v388_v46 = vld [vmem:[%s699_s10] ss:$0 sm:$0xff] }
  0x28   :  { %297 = vmatpush.msra.mxu3 %v271_v32  ;;  %v389_v49 = vld [vmem:[%s701_s12] ss:$0 sm:$0xff] }
  0x29   :  { %v391_v30 = vld [vmem:[#allocation2] ss:$0 sm:$0xff] }
  0x2a   :  { %298 = vmatpush.msra.mxu3 %v270_v33 }
  0x95   :  { %v150_v13 = vpop.xlane.xlu0 %149 }
  0x96   :  { %v178_v15 = vmul.f32 %v177_v12, %v150_v13 }
  0x9f   :  { %v174_v16 = vpop.f32.mrf.mxu0 }
  0xa0   :  { %v175_v17 = vadd.f32 %v383_v14, %v174_v16 }
  0xa1   :  { %v208_v23 = vpop.f32.mrf.mxu1 }
  0xa2   :  { %v179_v18 = vsub.f32 %v175_v17, %v178_v15 }
  0xa4   :  { %v180_v19 = vmin.f32 %v179_v18, 0.0 }
  0xa6   :  { %v181_v20 = vmul.f32 1.442695, %v180_v19 }
  0xa8   :  { %392 = vpow2.f32 %v181_v20 }
  0xae   :  { %v393_v22 = vpop.eup %392 }
  0xaf   :  { %v190_v24 = vmul.f32 %v393_v22, %v384_v21 }
  0xb1   :  { %v211_v26 = vadd.f32 %v208_v23, %v190_v24 }
  0xb3   :  { %v215_v27 = vadd.f32 %v385_v25, %v211_v26  ;;  %v390_v26 = vld [vmem:[%s702_s13] ss:$0 sm:$0xff] }
  0xb5   :  { %372 = vmatmul.msk.f32.vlgmr.msra.gmra.mxu2 %vm223_vm1, %v215_v27  ;;  %v222_v28 = vmul.f32 %v215_v27, %v215_v27 }
  0xb7   :  { %v224_v29 = vsel %vm223_vm1, %v222_v28, 0.0 }
  0xb8   :  { %225 = vadd.xlane.f32.xlu0 %v224_v29 }
 0x12b   :  { %v226_v36 = vpop.xlane.xlu0 %225 }
 0x12c   :  { %v254_v38 = vmul.f32 %v253_v35, %v226_v36 }
 0x138   :  { %v250_v37 = vpop.f32.mrf.mxu2 }
 0x139   :  { %v251_v39 = vadd.f32 %v386_v34, %v250_v37 }
 0x13b   :  { %v255_v40 = vsub.f32 %v251_v39, %v254_v38 }
 0x13d   :  { %v256_v41 = vmin.f32 %v255_v40, 0.0 }
 0x13f   :  { %v257_v42 = vmul.f32 1.442695, %v256_v41 }
 0x141   :  { %394 = vpow2.f32 %v257_v42 }
 0x147   :  { %v395_v44 = vpop.eup %394 }
 0x148   :  { %v261_v45 = vadd.f32 %v395_v44, %v215_v27 }
 0x14a   :  { %v265_v47 = vmul.f32 %v387_v43, %v261_v45 }
 0x14c   :  { %v269_v48 = vadd.f32 %v388_v46, %v265_v47 }
 0x14e   :  { %373 = vmatmul.msk.f32.vlgmr.msra.gmra.mxu3 %vm223_vm1, %v269_v48 }
 0x1d1   :  { %v300_v50 = vpop.f32.mrf.mxu3 }
 0x1d2   :  { %v301_v51 = vadd.f32 %v389_v49, %v300_v50 }
 0x1d4   :  { %v304_v52 = vmul.f32 0.70710677, %v301_v51  ;;  %v303_v24 = vmul.f32 0.5, %v301_v51 }
 0x1d6   :  { %v305_v53 = vmul.f32 %v304_v52, %v304_v52 }
 0x1d8   :  { %v306_v54 = vmin.f32 %v305_v53, 16.0 }
 0x1da   :  { %v307_v55 = vmul.f32 2.1237322e-06, %v306_v54  ;;  %v318_v56 = vmul.f32 3.8918573e-05, %v306_v54 }
 0x1dc   :  { %v308_v57 = vadd.f32 0.00028619796, %v307_v55  ;;  %v319_v58 = vadd.f32 0.001143296, %v318_v56 }
 0x1de   :  { %v309_v59 = vmul.f32 %v308_v57, %v306_v54  ;;  %v320_v60 = vmul.f32 %v319_v58, %v306_v54 }
 0x1e0   :  { %v321_v61 = vadd.f32 0.014752088, %v320_v60  ;;  %v310_v62 = vadd.f32 0.0036580483, %v309_v59 }
 0x1e2   :  { %v322_v63 = vmul.f32 %v321_v61, %v306_v54  ;;  %v311_v1 = vmul.f32 %v310_v62, %v306_v54 }
 0x1e4   :  { %v323_v0 = vadd.f32 0.112945676, %v322_v63  ;;  %v312_v4 = vadd.f32 0.05243302, %v311_v1 }
 0x1e6   :  { %v324_v2 = vmul.f32 %v323_v0, %v306_v54  ;;  %v313_v7 = vmul.f32 %v312_v4, %v306_v54 }
 0x1e8   :  { %v325_v3 = vadd.f32 0.4994258, %v324_v2  ;;  %v314_v8 = vadd.f32 0.18741608, %v313_v7 }
 0x1ea   :  { %v326_v5 = vmul.f32 %v325_v3, %v306_v54  ;;  %v315_v10 = vmul.f32 %v314_v8, %v306_v54 }
 0x1ec   :  { %v327_v6 = vadd.f32 1.0, %v326_v5  ;;  %v316_v14 = vadd.f32 1.1283791, %v315_v10 }
 0x1ee   :  { %396 = vrcp.f32 %v327_v6  ;;  %v339_v13 = vand.u32 2147483648, %v327_v6  ;;  %v337_v16 = vand.u32 2147483647, %v327_v6  ;;  %vm333_vm3 = vweird.f32 %v327_v6 }
 0x1ef   :  { %v317_v19 = vmul.f32 %v316_v14, %v304_v52 }
 0x1f0   :  { %v340_v18 = vor.u32 1.1754944e-38, %v339_v13  ;;  %vm338_vm5 = vcmp.eq.f32.partialorder %v337_v16, 8.507059e+37 }
 0x1f4   :  { %v397_v9 = vpop.eup %396 }
 0x1f5   :  { %v329_v11 = vmul.f32 %v397_v9, %v327_v6  ;;  %vm334_vm2 = vweird.f32 %v397_v9 }
 0x1f6   :  { %vm335_vm4 = vmor %vm333_vm3, %vm334_vm2 }
 0x1f7   :  { %v330_v12 = vsub.f32 1.0, %v329_v11 }
 0x1f9   :  { %v331_v15 = vmul.f32 %v397_v9, %v330_v12 }
 0x1fb   :  { %v332_v17 = vadd.f32 %v397_v9, %v331_v15 }
 0x1fd   :  { %v336_v20 = vsel %vm335_vm4, %v397_v9, %v332_v17 }
 0x1fe   :  { %v341_v21 = vsel %vm338_vm5, %v340_v18, %v336_v20 }
 0x1ff   :  { %v342_v22 = vmul.f32 %v341_v21, %v317_v19 }
 0x201   :  { %v374_v23 = vclamps-f32 %v342_v22, 1.0 }
 0x203   :  { %v345_v25 = vadd.f32 1.0, %v374_v23 }
 0x205   :  { %v346_v27 = vmul.f32 %v345_v25, %v303_v24 }
 0x207   :  { %v350_v28 = vmul.f32 %v390_v26, %v346_v27 }
 0x209   :  { %v352_v29 = vsel %vm351_vm6, %v350_v28, 0.0 }
 0x20a   :  { %353 = vadd.xlane.f32.xlu1 %v352_v29 }
 0x27d   :  { %v354_v31 = vpop.xlane.xlu1 %353 }
 0x27e   :  { %v358_v32 = vadd.f32 %v391_v30, %v354_v31 }
 0x280   :  { %360 = vst.msk [vmem:[%s704_s15] sm:$0xff] %vm359_vm7, %v358_v32 }
 0x281   :  { %365 = vsyncpa [#allocation4], 1 }
 0x282   :  { %366 = vsyncpa [#allocation8], 1 }
 0x283   :  { %367 = vsyncpa [#allocation11], 1 }
 0x284   :  { %368 = vsyncpa [#allocation5], 1 }

</bundles_post_ra>
